<compile_context>
chip_gen: v7x
topology: tpu7x:2x2x1
jax: 0.10.0
libtpu: 0.0.40
codegen_flags: <defaults>
</compile_context>

<pallas_src>
import math
import jax
import jax.numpy as jnp
from jax.experimental import pallas as pl
from jax.experimental.pallas import tpu as pltpu

# ----------------- static (small, synthetic) configuration -----------------
E_DIM = 16
HID = 32          # hidden_dim
OUT = 32          # out_dim (== hidden_dim; kernel stacking assumes this)
N_VERT = 64       # n_vertices (small synthetic stand-in for 27554)
N_LAYER_COMBINED = 6
N_PAIR = N_LAYER_COMBINED // 2   # fc+residual pairs (requires even n_layer_combined)
B, H, W = 2, 16, 16
SQRT2 = 1.4142135623730951
INV_SQRT2 = 0.7071067811865476


def _lrelu(y):
    # StyleGAN bias_act 'lrelu': leaky_relu(., 0.2) * sqrt(2)
    return jnp.where(y >= 0.0, y, 0.2 * y) * SQRT2


# --------------------------- fused forward kernel ---------------------------
def fused_kernel(idx_ref, e_ref, wE_ref, bE_ref, wcat_ref, bcat_ref,
                 wodd_ref, bodd_ref, out_ref):
    """map_network over all vertices + embedding gather, fully in VMEM.

    idx_ref : (1, B*HW)          int32  flattened vertex indices (all batches)
    e_ref   : (E_DIM, N_VERT)    f32    normalized E buffer, transposed
    wE_ref  : (HID, E_DIM)       f32    fromE0 weight (out, in), gain folded
    bE_ref  : (HID, 1)           f32
    wcat_ref: (N_PAIR, 2*HID, HID) f32  [fc_{2j}; residual_{2j+1}] stacked (out, in)
    bcat_ref: (N_PAIR, 2*HID, 1) f32
    wodd_ref: (N_PAIR, HID, HID) f32    fc_{2j+1} (out, in), gain folded
    bodd_ref: (N_PAIR, HID, 1)   f32
    out_ref : (B, OUT, HW)       f32    channels-first (NCHW after host reshape)
    """
    n_vert = e_ref.shape[1]
    nb, _, hw = out_ref.shape

    # ---- map_network, transposed orientation: activations are (HID, V) ----
    x = e_ref[...]                                                    # (E_DIM, V)
    x = _lrelu(jnp.dot(wE_ref[...], x, preferred_element_type=jnp.float32)
               + bE_ref[...])                                         # (HID, V)

    for j in range(N_PAIR):                                           # static unroll
        # fused even-layer fc + residual dot: one (2*HID, HID) @ (HID, V) pass
        y = (jnp.dot(wcat_ref[j], x, preferred_element_type=jnp.float32)
             + bcat_ref[j])                                           # (2*HID, V)
        h = _lrelu(y[:HID])                                           # fc_{2j} (lrelu)
        r = y[HID:]                                                   # residual_{2j+1} (linear)
        h = _lrelu(jnp.dot(wodd_ref[j], h, preferred_element_type=jnp.float32)
                   + bodd_ref[j])                                     # fc_{2j+1}
        x = (h + r) * INV_SQRT2                                       # new residual

    # x == w.T with shape (OUT, V): already the LHS the gather matmul wants.

    # ---- embedding: one lane-dense one-hot MXU matmul over all batches ----
    vid = jax.lax.broadcasted_iota(jnp.int32, (n_vert, nb * hw), 0)   # (V, B*HW)
    onehot = (vid == idx_ref[...]).astype(jnp.float32)                # (V, B*HW)
    emb = jnp.dot(x, onehot, preferred_element_type=jnp.float32)      # (OUT, B*HW)
    for b in range(nb):                                               # nb=2, static unroll
        out_ref[b] = emb[:, b * hw:(b + 1) * hw].astype(out_ref.dtype)


def fused_forward_pallas(idx_flat, params, nb, hw):
    return pl.pallas_call(
        fused_kernel,
        out_shape=jax.ShapeDtypeStruct((nb, OUT, hw), jnp.float32),
        grid_spec=pltpu.PrefetchScalarGridSpec(
            num_scalar_prefetch=0,
            grid=(1,),                                   # single grid step: all work fused
            in_specs=[
                pl.BlockSpec((1, nb * hw), lambda i: (0, 0)),
                pl.BlockSpec((E_DIM, N_VERT), lambda i: (0, 0)),
                pl.BlockSpec((HID, E_DIM), lambda i: (0, 0)),
                pl.BlockSpec((HID, 1), lambda i: (0, 0)),
                pl.BlockSpec((N_PAIR, 2 * HID, HID), lambda i: (0, 0, 0)),
                pl.BlockSpec((N_PAIR, 2 * HID, 1), lambda i: (0, 0, 0)),
                pl.BlockSpec((N_PAIR, HID, HID), lambda i: (0, 0, 0)),
                pl.BlockSpec((N_PAIR, HID, 1), lambda i: (0, 0, 0)),
            ],
            out_specs=pl.BlockSpec((nb, OUT, hw), lambda i: (0, 0, 0)),
        ),
        # TODO(synk): at production sizes, tile the vertex axis, mark it
        # "parallel" (2 TCs on v7x) and set vmem_limit_bytes per chip.
        compiler_params=pltpu.CompilerParams(dimension_semantics=("arbitrary",)),
    )(idx_flat, params["E_t"], params["wE_g"], params["bE_col"],
      params["w_cat"], params["b_cat"], params["w_odd"], params["b_odd"])


# ------------------------------ glue / params -------------------------------
def init_params(key):
    """Deterministic synthetic parameters matching the module's __init__ shapes."""
    ks = jax.random.split(key, 16)
    # E buffer: synthetic embed stats -> (E - mean) * rstd  (done in __init__)
    E_raw = jax.random.normal(ks[0], (N_VERT, E_DIM), jnp.float32)
    E_norm = (E_raw - E_raw.mean(0, keepdims=True)) / (E_raw.std(0, keepdims=True) + 1e-8)

    # FullyConnectedLayer init: weight = randn(out, in) / lr_multiplier, bias = 0
    wE = jax.random.normal(ks[1], (HID, E_DIM), jnp.float32)          # fromE0
    bE = jnp.zeros((HID,), jnp.float32)
    fc_ws = [jax.random.normal(ks[2 + i], (HID, HID), jnp.float32) for i in range(6)]
    fc_bs = [jnp.zeros((HID,), jnp.float32) for _ in range(6)]
    res_ws = {i: jax.random.normal(ks[8 + j], (HID, HID), jnp.float32)
              for j, i in enumerate((1, 3, 5))}
    res_bs = {i: jnp.zeros((HID,), jnp.float32) for i in (1, 3, 5)}

    # Kernel-side tensors: f32, native (out, in) layout (transposed orientation
    # runs y = W @ x), 1/sqrt(in) gain pre-folded, even-layer fc + residual
    # concatenated along the output dim so each pair shares one MXU dot.
    wg_e = 1.0 / math.sqrt(E_DIM)
    wg_h = 1.0 / math.sqrt(HID)
    E_t = E_norm.T                                                     # (E_DIM, V)
    wE_g = wE * wg_e                                                   # (HID, E_DIM)
    bE_col = bE[:, None]                                               # (HID, 1)
    w_cat = jnp.stack([jnp.concatenate([fc_ws[2 * j], res_ws[2 * j + 1]], axis=0)
                       for j in range(N_PAIR)]) * wg_h                 # (3, 2*HID, HID)
    b_cat = jnp.stack([jnp.concatenate([fc_bs[2 * j], res_bs[2 * j + 1]])
                       for j in range(N_PAIR)])[:, :, None]            # (3, 2*HID, 1)
    w_odd = jnp.stack([fc_ws[2 * j + 1] for j in range(N_PAIR)]) * wg_h  # (3, HID, HID)
    b_odd = jnp.stack([fc_bs[2 * j + 1] for j in range(N_PAIR)])[:, :, None]

    return dict(E_norm=E_norm, wE=wE, bE=bE, fc_ws=fc_ws, fc_bs=fc_bs,
                res_ws=res_ws, res_bs=res_bs,
                E_t=E_t, wE_g=wE_g, bE_col=bE_col,
                w_cat=w_cat, b_cat=b_cat, w_odd=w_odd, b_odd=b_odd)


def cse_latent_mapper_forward(vertices, params, z=None, w=None, update_ema=False):
    """Mirrors CSELatentMapper.forward for the default input_z=False config."""
    assert w is None, "external-w override path not implemented (see TODO above)"
    idx = vertices.reshape(-1, vertices.shape[-2], vertices.shape[-1])     # (B, H, W)
    nb, h, wd = idx.shape
    hw = h * wd
    idx_flat = idx.reshape(1, nb * hw).astype(jnp.int32)                   # (1, B*HW)
    out_flat = fused_forward_pallas(idx_flat, params, nb, hw)              # (B, OUT, HW)
    return out_flat.reshape(nb, OUT, h, wd)                                # layout: NCHW


# ------------------------------ pure-JAX reference ---------------------------
def _reference_forward(vertices, params):
    hp = jax.lax.Precision.HIGHEST

    def fcl(x, wt, b, act):
        wg = 1.0 / math.sqrt(wt.shape[1])
        y = jnp.dot(x, (wt * wg).T, precision=hp) + b
        return _lrelu(y) if act == "lrelu" else y

    x = fcl(params["E_norm"], params["wE"], params["bE"], "lrelu")
    residual = x
    for idx in range(N_LAYER_COMBINED):
        x = fcl(x, params["fc_ws"][idx], params["fc_bs"][idx], "lrelu")
        if (idx + 1) % 2 == 0:
            r = fcl(residual, params["res_ws"][idx], params["res_bs"][idx], "linear")
            x = (x + r) / SQRT2
            residual = x
    emb = x[vertices]                        # (B, H, W, OUT)
    return jnp.transpose(emb, (0, 3, 1, 2))  # NCHW


# ----------------------------------- main ------------------------------------
if __name__ == "__main__":
    key = jax.random.PRNGKey(0)
    kp, kv = jax.random.split(key)
    params = init_params(kp)
    vertices = jax.random.randint(kv, (B, H, W), 0, N_VERT, dtype=jnp.int32)

    out = cse_latent_mapper_forward(vertices, params)
    out = jax.block_until_ready(out)

    ref = _reference_forward(vertices, params)
    assert out.shape == (B, OUT, H, W), out.shape
    # Full-f32 kernel path (Pallas f32 dots are multi-pass on the MXU), so a
    # tight tolerance applies — 100x tighter than the previous bf16 version.
    assert jnp.allclose(out, ref, atol=1e-3, rtol=1e-3), float(jnp.max(jnp.abs(out - ref)))

    print("KERNEL_OK")
</pallas_src>

<mosaic_0001>
module attributes {stable_mosaic.version = 11 : i64} {
  func.func @fused_kernel(%arg0: i32, %arg1: memref<1x512xi32, #tpu.memory_space<vmem>>, %arg2: memref<16x64xf32, #tpu.memory_space<vmem>>, %arg3: memref<32x16xf32, #tpu.memory_space<vmem>>, %arg4: memref<32x1xf32, #tpu.memory_space<vmem>>, %arg5: memref<3x64x32xf32, #tpu.memory_space<vmem>>, %arg6: memref<3x64x1xf32, #tpu.memory_space<vmem>>, %arg7: memref<3x32x32xf32, #tpu.memory_space<vmem>>, %arg8: memref<3x32x1xf32, #tpu.memory_space<vmem>>, %arg9: memref<2x32x256xf32, #tpu.memory_space<vmem>>) attributes {dimension_semantics = [#tpu.dimension_semantics<arbitrary>], iteration_bounds = array<i64: 1>, scalar_prefetch = 0 : i64, scratch_operands = 0 : i64, tpu.core_type = #tpu.core_type<tc>, window_params = [{pipeline_mode = #tpu.pipeline_mode<synchronous>, transform_indices = @transform_0, window_bounds = array<i64: 1, 512>}, {pipeline_mode = #tpu.pipeline_mode<synchronous>, transform_indices = @transform_1, window_bounds = array<i64: 16, 64>}, {pipeline_mode = #tpu.pipeline_mode<synchronous>, transform_indices = @transform_2, window_bounds = array<i64: 32, 16>}, {pipeline_mode = #tpu.pipeline_mode<synchronous>, transform_indices = @transform_3, window_bounds = array<i64: 32, 1>}, {pipeline_mode = #tpu.pipeline_mode<synchronous>, transform_indices = @transform_4, window_bounds = array<i64: 3, 64, 32>}, {pipeline_mode = #tpu.pipeline_mode<synchronous>, transform_indices = @transform_5, window_bounds = array<i64: 3, 64, 1>}, {pipeline_mode = #tpu.pipeline_mode<synchronous>, transform_indices = @transform_6, window_bounds = array<i64: 3, 32, 32>}, {pipeline_mode = #tpu.pipeline_mode<synchronous>, transform_indices = @transform_7, window_bounds = array<i64: 3, 32, 1>}, {pipeline_mode = #tpu.pipeline_mode<synchronous>, transform_indices = @transform_8, window_bounds = array<i64: 2, 32, 256>}]} {
    %c0 = arith.constant 0 : index
    %c0_0 = arith.constant 0 : index
    %0 = vector.load %arg2[%c0, %c0_0] : memref<16x64xf32, #tpu.memory_space<vmem>>, vector<16x64xf32>
    %c0_1 = arith.constant 0 : index
    %c0_2 = arith.constant 0 : index
    %1 = vector.load %arg3[%c0_1, %c0_2] : memref<32x16xf32, #tpu.memory_space<vmem>>, vector<32x16xf32>
    %cst = arith.constant dense<0.000000e+00> : vector<32x64xf32>
    %2 = tpu.matmul %1, %0, %cst {dimension_numbers = #tpu.dot_dimension_numbers<[1], [0], [0], [1], [0, 0, 1, 1], [], []>} : vector<32x16xf32>, vector<16x64xf32>, vector<32x64xf32> -> vector<32x64xf32>
    %c0_3 = arith.constant 0 : index
    %c0_4 = arith.constant 0 : index
    %3 = vector.load %arg4[%c0_3, %c0_4] : memref<32x1xf32, #tpu.memory_space<vmem>>, vector<32x1xf32>
    %4 = vector.broadcast %3 : vector<32x1xf32> to vector<32x64xf32>
    %5 = arith.addf %2, %4 : vector<32x64xf32>
    %cst_5 = arith.constant 0.000000e+00 : f32
    %6 = vector.broadcast %cst_5 : f32 to vector<32x64xf32>
    %7 = arith.cmpf oge, %5, %6 : vector<32x64xf32>
    %cst_6 = arith.constant 2.000000e-01 : f32
    %8 = vector.broadcast %cst_6 : f32 to vector<32x64xf32>
    %9 = arith.mulf %8, %5 : vector<32x64xf32>
    %10 = arith.select %7, %5, %9 : vector<32x64xi1>, vector<32x64xf32>
    %cst_7 = arith.constant 1.41421354 : f32
    %11 = vector.broadcast %cst_7 : f32 to vector<32x64xf32>
    %12 = arith.mulf %10, %11 : vector<32x64xf32>
    %c0_8 = arith.constant 0 : index
    %c0_9 = arith.constant 0 : index
    %c0_10 = arith.constant 0 : index
    %13 = vector.load %arg5[%c0_8, %c0_9, %c0_10] : memref<3x64x32xf32, #tpu.memory_space<vmem>>, vector<1x64x32xf32>
    %14 = vector.shape_cast %13 : vector<1x64x32xf32> to vector<64x32xf32>
    %cst_11 = arith.constant dense<0.000000e+00> : vector<64x64xf32>
    %15 = tpu.matmul %14, %12, %cst_11 {dimension_numbers = #tpu.dot_dimension_numbers<[1], [0], [0], [1], [0, 0, 1, 1], [], []>} : vector<64x32xf32>, vector<32x64xf32>, vector<64x64xf32> -> vector<64x64xf32>
    %c0_12 = arith.constant 0 : index
    %c0_13 = arith.constant 0 : index
    %c0_14 = arith.constant 0 : index
    %16 = vector.load %arg6[%c0_12, %c0_13, %c0_14] : memref<3x64x1xf32, #tpu.memory_space<vmem>>, vector<1x64x1xf32>
    %17 = vector.shape_cast %16 : vector<1x64x1xf32> to vector<64x1xf32>
    %18 = vector.broadcast %17 : vector<64x1xf32> to vector<64x64xf32>
    %19 = arith.addf %15, %18 : vector<64x64xf32>
    %20 = vector.extract_strided_slice %19 {offsets = [0, 0], sizes = [32, 64], strides = [1, 1]} : vector<64x64xf32> to vector<32x64xf32>
    %cst_15 = arith.constant 0.000000e+00 : f32
    %21 = vector.broadcast %cst_15 : f32 to vector<32x64xf32>
    %22 = arith.cmpf oge, %20, %21 : vector<32x64xf32>
    %cst_16 = arith.constant 2.000000e-01 : f32
    %23 = vector.broadcast %cst_16 : f32 to vector<32x64xf32>
    %24 = arith.mulf %23, %20 : vector<32x64xf32>
    %25 = arith.select %22, %20, %24 : vector<32x64xi1>, vector<32x64xf32>
    %cst_17 = arith.constant 1.41421354 : f32
    %26 = vector.broadcast %cst_17 : f32 to vector<32x64xf32>
    %27 = arith.mulf %25, %26 : vector<32x64xf32>
    %28 = vector.extract_strided_slice %19 {offsets = [32, 0], sizes = [32, 64], strides = [1, 1]} : vector<64x64xf32> to vector<32x64xf32>
    %c0_18 = arith.constant 0 : index
    %c0_19 = arith.constant 0 : index
    %c0_20 = arith.constant 0 : index
    %29 = vector.load %arg7[%c0_18, %c0_19, %c0_20] : memref<3x32x32xf32, #tpu.memory_space<vmem>>, vector<1x32x32xf32>
    %30 = vector.shape_cast %29 : vector<1x32x32xf32> to vector<32x32xf32>
    %cst_21 = arith.constant dense<0.000000e+00> : vector<32x64xf32>
    %31 = tpu.matmul %30, %27, %cst_21 {dimension_numbers = #tpu.dot_dimension_numbers<[1], [0], [0], [1], [0, 0, 1, 1], [], []>} : vector<32x32xf32>, vector<32x64xf32>, vector<32x64xf32> -> vector<32x64xf32>
    %c0_22 = arith.constant 0 : index
    %c0_23 = arith.constant 0 : index
    %c0_24 = arith.constant 0 : index
    %32 = vector.load %arg8[%c0_22, %c0_23, %c0_24] : memref<3x32x1xf32, #tpu.memory_space<vmem>>, vector<1x32x1xf32>
    %33 = vector.shape_cast %32 : vector<1x32x1xf32> to vector<32x1xf32>
    %34 = vector.broadcast %33 : vector<32x1xf32> to vector<32x64xf32>
    %35 = arith.addf %31, %34 : vector<32x64xf32>
    %cst_25 = arith.constant 0.000000e+00 : f32
    %36 = vector.broadcast %cst_25 : f32 to vector<32x64xf32>
    %37 = arith.cmpf oge, %35, %36 : vector<32x64xf32>
    %cst_26 = arith.constant 2.000000e-01 : f32
    %38 = vector.broadcast %cst_26 : f32 to vector<32x64xf32>
    %39 = arith.mulf %38, %35 : vector<32x64xf32>
    %40 = arith.select %37, %35, %39 : vector<32x64xi1>, vector<32x64xf32>
    %cst_27 = arith.constant 1.41421354 : f32
    %41 = vector.broadcast %cst_27 : f32 to vector<32x64xf32>
    %42 = arith.mulf %40, %41 : vector<32x64xf32>
    %43 = arith.addf %42, %28 : vector<32x64xf32>
    %cst_28 = arith.constant 0.707106769 : f32
    %44 = vector.broadcast %cst_28 : f32 to vector<32x64xf32>
    %45 = arith.mulf %43, %44 : vector<32x64xf32>
    %c1 = arith.constant 1 : index
    %c0_29 = arith.constant 0 : index
    %c0_30 = arith.constant 0 : index
    %46 = vector.load %arg5[%c1, %c0_29, %c0_30] : memref<3x64x32xf32, #tpu.memory_space<vmem>>, vector<1x64x32xf32>
    %47 = vector.shape_cast %46 : vector<1x64x32xf32> to vector<64x32xf32>
    %cst_31 = arith.constant dense<0.000000e+00> : vector<64x64xf32>
    %48 = tpu.matmul %47, %45, %cst_31 {dimension_numbers = #tpu.dot_dimension_numbers<[1], [0], [0], [1], [0, 0, 1, 1], [], []>} : vector<64x32xf32>, vector<32x64xf32>, vector<64x64xf32> -> vector<64x64xf32>
    %c1_32 = arith.constant 1 : index
    %c0_33 = arith.constant 0 : index
    %c0_34 = arith.constant 0 : index
    %49 = vector.load %arg6[%c1_32, %c0_33, %c0_34] : memref<3x64x1xf32, #tpu.memory_space<vmem>>, vector<1x64x1xf32>
    %50 = vector.shape_cast %49 : vector<1x64x1xf32> to vector<64x1xf32>
    %51 = vector.broadcast %50 : vector<64x1xf32> to vector<64x64xf32>
    %52 = arith.addf %48, %51 : vector<64x64xf32>
    %53 = vector.extract_strided_slice %52 {offsets = [0, 0], sizes = [32, 64], strides = [1, 1]} : vector<64x64xf32> to vector<32x64xf32>
    %cst_35 = arith.constant 0.000000e+00 : f32
    %54 = vector.broadcast %cst_35 : f32 to vector<32x64xf32>
    %55 = arith.cmpf oge, %53, %54 : vector<32x64xf32>
    %cst_36 = arith.constant 2.000000e-01 : f32
    %56 = vector.broadcast %cst_36 : f32 to vector<32x64xf32>
    %57 = arith.mulf %56, %53 : vector<32x64xf32>
    %58 = arith.select %55, %53, %57 : vector<32x64xi1>, vector<32x64xf32>
    %cst_37 = arith.constant 1.41421354 : f32
    %59 = vector.broadcast %cst_37 : f32 to vector<32x64xf32>
    %60 = arith.mulf %58, %59 : vector<32x64xf32>
    %61 = vector.extract_strided_slice %52 {offsets = [32, 0], sizes = [32, 64], strides = [1, 1]} : vector<64x64xf32> to vector<32x64xf32>
    %c1_38 = arith.constant 1 : index
    %c0_39 = arith.constant 0 : index
    %c0_40 = arith.constant 0 : index
    %62 = vector.load %arg7[%c1_38, %c0_39, %c0_40] : memref<3x32x32xf32, #tpu.memory_space<vmem>>, vector<1x32x32xf32>
    %63 = vector.shape_cast %62 : vector<1x32x32xf32> to vector<32x32xf32>
    %cst_41 = arith.constant dense<0.000000e+00> : vector<32x64xf32>
    %64 = tpu.matmul %63, %60, %cst_41 {dimension_numbers = #tpu.dot_dimension_numbers<[1], [0], [0], [1], [0, 0, 1, 1], [], []>} : vector<32x32xf32>, vector<32x64xf32>, vector<32x64xf32> -> vector<32x64xf32>
    %c1_42 = arith.constant 1 : index
    %c0_43 = arith.constant 0 : index
    %c0_44 = arith.constant 0 : index
    %65 = vector.load %arg8[%c1_42, %c0_43, %c0_44] : memref<3x32x1xf32, #tpu.memory_space<vmem>>, vector<1x32x1xf32>
    %66 = vector.shape_cast %65 : vector<1x32x1xf32> to vector<32x1xf32>
    %67 = vector.broadcast %66 : vector<32x1xf32> to vector<32x64xf32>
    %68 = arith.addf %64, %67 : vector<32x64xf32>
    %cst_45 = arith.constant 0.000000e+00 : f32
    %69 = vector.broadcast %cst_45 : f32 to vector<32x64xf32>
    %70 = arith.cmpf oge, %68, %69 : vector<32x64xf32>
    %cst_46 = arith.constant 2.000000e-01 : f32
    %71 = vector.broadcast %cst_46 : f32 to vector<32x64xf32>
    %72 = arith.mulf %71, %68 : vector<32x64xf32>
    %73 = arith.select %70, %68, %72 : vector<32x64xi1>, vector<32x64xf32>
    %cst_47 = arith.constant 1.41421354 : f32
    %74 = vector.broadcast %cst_47 : f32 to vector<32x64xf32>
    %75 = arith.mulf %73, %74 : vector<32x64xf32>
    %76 = arith.addf %75, %61 : vector<32x64xf32>
    %cst_48 = arith.constant 0.707106769 : f32
    %77 = vector.broadcast %cst_48 : f32 to vector<32x64xf32>
    %78 = arith.mulf %76, %77 : vector<32x64xf32>
    %c2 = arith.constant 2 : index
    %c0_49 = arith.constant 0 : index
    %c0_50 = arith.constant 0 : index
    %79 = vector.load %arg5[%c2, %c0_49, %c0_50] : memref<3x64x32xf32, #tpu.memory_space<vmem>>, vector<1x64x32xf32>
    %80 = vector.shape_cast %79 : vector<1x64x32xf32> to vector<64x32xf32>
    %cst_51 = arith.constant dense<0.000000e+00> : vector<64x64xf32>
    %81 = tpu.matmul %80, %78, %cst_51 {dimension_numbers = #tpu.dot_dimension_numbers<[1], [0], [0], [1], [0, 0, 1, 1], [], []>} : vector<64x32xf32>, vector<32x64xf32>, vector<64x64xf32> -> vector<64x64xf32>
    %c2_52 = arith.constant 2 : index
    %c0_53 = arith.constant 0 : index
    %c0_54 = arith.constant 0 : index
    %82 = vector.load %arg6[%c2_52, %c0_53, %c0_54] : memref<3x64x1xf32, #tpu.memory_space<vmem>>, vector<1x64x1xf32>
    %83 = vector.shape_cast %82 : vector<1x64x1xf32> to vector<64x1xf32>
    %84 = vector.broadcast %83 : vector<64x1xf32> to vector<64x64xf32>
    %85 = arith.addf %81, %84 : vector<64x64xf32>
    %86 = vector.extract_strided_slice %85 {offsets = [0, 0], sizes = [32, 64], strides = [1, 1]} : vector<64x64xf32> to vector<32x64xf32>
    %cst_55 = arith.constant 0.000000e+00 : f32
    %87 = vector.broadcast %cst_55 : f32 to vector<32x64xf32>
    %88 = arith.cmpf oge, %86, %87 : vector<32x64xf32>
    %cst_56 = arith.constant 2.000000e-01 : f32
    %89 = vector.broadcast %cst_56 : f32 to vector<32x64xf32>
    %90 = arith.mulf %89, %86 : vector<32x64xf32>
    %91 = arith.select %88, %86, %90 : vector<32x64xi1>, vector<32x64xf32>
    %cst_57 = arith.constant 1.41421354 : f32
    %92 = vector.broadcast %cst_57 : f32 to vector<32x64xf32>
    %93 = arith.mulf %91, %92 : vector<32x64xf32>
    %94 = vector.extract_strided_slice %85 {offsets = [32, 0], sizes = [32, 64], strides = [1, 1]} : vector<64x64xf32> to vector<32x64xf32>
    %c2_58 = arith.constant 2 : index
    %c0_59 = arith.constant 0 : index
    %c0_60 = arith.constant 0 : index
    %95 = vector.load %arg7[%c2_58, %c0_59, %c0_60] : memref<3x32x32xf32, #tpu.memory_space<vmem>>, vector<1x32x32xf32>
    %96 = vector.shape_cast %95 : vector<1x32x32xf32> to vector<32x32xf32>
    %cst_61 = arith.constant dense<0.000000e+00> : vector<32x64xf32>
    %97 = tpu.matmul %96, %93, %cst_61 {dimension_numbers = #tpu.dot_dimension_numbers<[1], [0], [0], [1], [0, 0, 1, 1], [], []>} : vector<32x32xf32>, vector<32x64xf32>, vector<32x64xf32> -> vector<32x64xf32>
    %c2_62 = arith.constant 2 : index
    %c0_63 = arith.constant 0 : index
    %c0_64 = arith.constant 0 : index
    %98 = vector.load %arg8[%c2_62, %c0_63, %c0_64] : memref<3x32x1xf32, #tpu.memory_space<vmem>>, vector<1x32x1xf32>
    %99 = vector.shape_cast %98 : vector<1x32x1xf32> to vector<32x1xf32>
    %100 = vector.broadcast %99 : vector<32x1xf32> to vector<32x64xf32>
    %101 = arith.addf %97, %100 : vector<32x64xf32>
    %cst_65 = arith.constant 0.000000e+00 : f32
    %102 = vector.broadcast %cst_65 : f32 to vector<32x64xf32>
    %103 = arith.cmpf oge, %101, %102 : vector<32x64xf32>
    %cst_66 = arith.constant 2.000000e-01 : f32
    %104 = vector.broadcast %cst_66 : f32 to vector<32x64xf32>
    %105 = arith.mulf %104, %101 : vector<32x64xf32>
    %106 = arith.select %103, %101, %105 : vector<32x64xi1>, vector<32x64xf32>
    %cst_67 = arith.constant 1.41421354 : f32
    %107 = vector.broadcast %cst_67 : f32 to vector<32x64xf32>
    %108 = arith.mulf %106, %107 : vector<32x64xf32>
    %109 = arith.addf %108, %94 : vector<32x64xf32>
    %cst_68 = arith.constant 0.707106769 : f32
    %110 = vector.broadcast %cst_68 : f32 to vector<32x64xf32>
    %111 = arith.mulf %109, %110 : vector<32x64xf32>
    %112 = tpu.iota {dimensions = array<i32: 0>} : vector<64x512xi32>
    %c0_69 = arith.constant 0 : index
    %c0_70 = arith.constant 0 : index
    %113 = vector.load %arg1[%c0_69, %c0_70] : memref<1x512xi32, #tpu.memory_space<vmem>>, vector<1x512xi32>
    %114 = vector.broadcast %113 : vector<1x512xi32> to vector<64x512xi32>
    %115 = arith.cmpi eq, %112, %114 : vector<64x512xi32>
    %116 = arith.extui %115 : vector<64x512xi1> to vector<64x512xi32>
    %117 = arith.sitofp %116 : vector<64x512xi32> to vector<64x512xf32>
    %cst_71 = arith.constant dense<0.000000e+00> : vector<32x512xf32>
    %118 = tpu.matmul %111, %117, %cst_71 {dimension_numbers = #tpu.dot_dimension_numbers<[1], [0], [0], [1], [0, 0, 1, 1], [], []>} : vector<32x64xf32>, vector<64x512xf32>, vector<32x512xf32> -> vector<32x512xf32>
    %119 = vector.extract_strided_slice %118 {offsets = [0, 0], sizes = [32, 256], strides = [1, 1]} : vector<32x512xf32> to vector<32x256xf32>
    %c0_72 = arith.constant 0 : index
    %c0_73 = arith.constant 0 : index
    %c0_74 = arith.constant 0 : index
    %120 = vector.load %arg9[%c0_72, %c0_73, %c0_74] : memref<2x32x256xf32, #tpu.memory_space<vmem>>, vector<1x32x256xf32>
    %121 = vector.shape_cast %120 : vector<1x32x256xf32> to vector<32x256xf32>
    %122 = vector.shape_cast %119 : vector<32x256xf32> to vector<1x32x256xf32>
    tpu.vector_store %arg9[%c0_72, %c0_73, %c0_74], %122 {strides = array<i32>} : memref<2x32x256xf32, #tpu.memory_space<vmem>>, vector<1x32x256xf32>,
    %123 = vector.extract_strided_slice %118 {offsets = [0, 256], sizes = [32, 256], strides = [1, 1]} : vector<32x512xf32> to vector<32x256xf32>
    %c1_75 = arith.constant 1 : index
    %c0_76 = arith.constant 0 : index
    %c0_77 = arith.constant 0 : index
    %124 = vector.load %arg9[%c1_75, %c0_76, %c0_77] : memref<2x32x256xf32, #tpu.memory_space<vmem>>, vector<1x32x256xf32>
    %125 = vector.shape_cast %124 : vector<1x32x256xf32> to vector<32x256xf32>
    %126 = vector.shape_cast %123 : vector<32x256xf32> to vector<1x32x256xf32>
    tpu.vector_store %arg9[%c1_75, %c0_76, %c0_77], %126 {strides = array<i32>} : memref<2x32x256xf32, #tpu.memory_space<vmem>>, vector<1x32x256xf32>,
    return
  }
  func.func @transform_0(%arg0: i32) -> (i32, i32) {
    %c0_i32 = arith.constant 0 : i32
    %c0_i32_0 = arith.constant 0 : i32
    %c0_i32_1 = arith.constant 0 : i32
    return %c0_i32, %c0_i32_0 : i32, i32
  }
  func.func @transform_1(%arg0: i32) -> (i32, i32) {
    %c0_i32 = arith.constant 0 : i32
    %c0_i32_0 = arith.constant 0 : i32
    %c0_i32_1 = arith.constant 0 : i32
    return %c0_i32, %c0_i32_0 : i32, i32
  }
  func.func @transform_2(%arg0: i32) -> (i32, i32) {
    %c0_i32 = arith.constant 0 : i32
    %c0_i32_0 = arith.constant 0 : i32
    %c0_i32_1 = arith.constant 0 : i32
    return %c0_i32, %c0_i32_0 : i32, i32
  }
  func.func @transform_3(%arg0: i32) -> (i32, i32) {
    %c0_i32 = arith.constant 0 : i32
    %c0_i32_0 = arith.constant 0 : i32
    %c0_i32_1 = arith.constant 0 : i32
    return %c0_i32, %c0_i32_0 : i32, i32
  }
  func.func @transform_4(%arg0: i32) -> (i32, i32, i32) {
    %c0_i32 = arith.constant 0 : i32
    %c0_i32_0 = arith.constant 0 : i32
    %c0_i32_1 = arith.constant 0 : i32
    %c0_i32_2 = arith.constant 0 : i32
    return %c0_i32, %c0_i32_0, %c0_i32_1 : i32, i32, i32
  }
  func.func @transform_5(%arg0: i32) -> (i32, i32, i32) {
    %c0_i32 = arith.constant 0 : i32
    %c0_i32_0 = arith.constant 0 : i32
    %c0_i32_1 = arith.constant 0 : i32
    %c0_i32_2 = arith.constant 0 : i32
    return %c0_i32, %c0_i32_0, %c0_i32_1 : i32, i32, i32
  }
  func.func @transform_6(%arg0: i32) -> (i32, i32, i32) {
    %c0_i32 = arith.constant 0 : i32
    %c0_i32_0 = arith.constant 0 : i32
    %c0_i32_1 = arith.constant 0 : i32
    %c0_i32_2 = arith.constant 0 : i32
    return %c0_i32, %c0_i32_0, %c0_i32_1 : i32, i32, i32
  }
  func.func @transform_7(%arg0: i32) -> (i32, i32, i32) {
    %c0_i32 = arith.constant 0 : i32
    %c0_i32_0 = arith.constant 0 : i32
    %c0_i32_1 = arith.constant 0 : i32
    %c0_i32_2 = arith.constant 0 : i32
    return %c0_i32, %c0_i32_0, %c0_i32_1 : i32, i32, i32
  }
  func.func @transform_8(%arg0: i32) -> (i32, i32, i32) {
    %c0_i32 = arith.constant 0 : i32
    %c0_i32_0 = arith.constant 0 : i32
    %c0_i32_1 = arith.constant 0 : i32
    %c0_i32_2 = arith.constant 0 : i32
    return %c0_i32, %c0_i32_0, %c0_i32_1 : i32, i32, i32
  }
}

</mosaic_0001>

<bundles_post_ra>
// kernel: tpu_custom_call.1
= control target key start
LH: loop header
LB: loop body
LE: loop exit
PB: predicated region body
PF: predicated region fallthrough
CT: control target
= control target key end

     0   :  { %vm60_vm0 = vcmask 130048   ;;  %v2033_v4 = vmov 0   ;;  %s2484_s0 = inlined_call_operand.vmem [shape: s32[1,512], index: 0, kind: input, shape index: {}]   ;;  %s2485_s1 = inlined_call_operand.vmem [shape: f32[16,64], index: 1, kind: input, shape index: {}]   ;;  %s2486_s2 = inlined_call_operand.vmem [shape: f32[32,16], index: 2, kind: input, shape index: {}]   ;;  %s2487_s3 = inlined_call_operand.vmem [shape: f32[32,1], index: 3, kind: input, shape index: {}]   ;;  %s2488_s4 = inlined_call_operand.vmem [shape: f32[3,64,32], index: 4, kind: input, shape index: {}]   ;;  %s2489_s5 = inlined_call_operand.vmem [shape: f32[3,64,1], index: 5, kind: input, shape index: {}]   ;;  %s2490_s6 = inlined_call_operand.vmem [shape: f32[3,32,32], index: 6, kind: input, shape index: {}]   ;;  %s2491_s7 = inlined_call_operand.vmem [shape: f32[3,32,1], index: 7, kind: input, shape index: {}]   ;;  %s2492_s8 = inlined_call_operand.hbm [shape: f32[2,32,256], index: 8, kind: output, shape index: {}]  }
   0x1   :  { %v30_v0 = vld [vmem:[%s2485_s1] sm:$0xff]  ;;  %v31_v1 = vld [vmem:[%s2485_s1 + $0x8] sm:$0xff]  ;;  %2007 = vset.pattern.permute.xlu0 %v2033_v4  ;;  %2008 = vset.pattern.permute.xlu1 %v2033_v4  ;;  %v38_v6 = vld [vmem:[%s2487_s3 + $0x10] sm:$0xff] }
   0x2   :  { %v32_v2 = vld [vmem:[%s2486_s2] sm:$0xff]  ;;  %v1917_v3 = vpack.c.bf16 %v31_v1, %v30_v0  ;;  %v33_v7 = vld [vmem:[%s2486_s2 + $0x8] sm:$0xff]  ;;  %52 = vperm.xlu1 %2008, %v38_v6   ;;  %v34_v9 = vld [vmem:[%s2486_s2 + $0x10] sm:$0xff] }
   0x3   :  { %1809 = vmatprep.mubr.msk.f32.mxu0 %vm60_vm0, %v32_v2  ;;  %v36_v5 = vld [vmem:[%s2487_s3] sm:$0xff]  ;;  %v37_v8 = vld [vmem:[%s2487_s3 + $0x8] sm:$0xff]  ;;  %v39_v10 = vld [vmem:[%s2487_s3 + $0x18] sm:$0xff] }
   0x4   :  { %1918 = vmatprep.subr.bf16.mxu0 %v1917_v3  ;;  %42 = vperm.xlu0 %2007, %v36_v5   ;;  %v35_v11 = vld [vmem:[%s2486_s2 + $0x18] sm:$0xff]  ;;  %v182_v12 = vld [vmem:[%s2489_s5] sm:$0xff]  ;;  %v183_v13 = vld [vmem:[%s2489_s5 + $0x8] sm:$0xff] }
   0x5   :  { %1920 = vmatpush3.bf16.msra.mxu0 %v1917_v3  ;;  %v184_v14 = vld [vmem:[%s2489_s5 + $0x10] sm:$0xff]  ;;  %v185_v15 = vld [vmem:[%s2489_s5 + $0x18] sm:$0xff] }
   0x6   :  { %57 = vperm.xlu1 %2008, %v39_v10  }
   0x8   :  { %1810 = vmatmul.mubr.msk.f32.vlgmr.msra.gmra.mrb[0].mxu0 %vm60_vm0, %v33_v7  ;;  %47 = vperm.xlu0 %2007, %v37_v8  }
   0x9   :  { %1812 = vmatprep.mubr.msk.f32.mxu0 %vm60_vm0, %v34_v9 }
   0xa   :  { %197 = vperm.xlu1 %2008, %v183_v13  }
   0xc   :  { %1813 = vmatmul.mubr.msk.f32.gmra.mrb[2].mxu0 %vm60_vm0, %v35_v11  ;;  %192 = vperm.xlu0 %2007, %v182_v12  }
  0x10   :  { %202 = vperm.xlu0 %2007, %v184_v14  }
  0x11   :  { %13 = vsyncpa [#allocation3], 0  ;;  %207 = vperm.xlu1 %2008, %v185_v15   ;;  %v380_v16 = vld [vmem:[%s2491_s7] sm:$0xff]  ;;  %v381_v17 = vld [vmem:[%s2491_s7 + $0x8] sm:$0xff]  ;;  %vm230_vm1 = vcmask 261120  }
  0x12   :  { %v382_v18 = vld [vmem:[%s2491_s7 + $0x10] sm:$0xff]  ;;  %v383_v19 = vld [vmem:[%s2491_s7 + $0x18] sm:$0xff]  ;;  %v186_v20 = vld [vmem:[%s2489_s5 + $0x20] sm:$0xff] }
  0x13   :  { %v187_v21 = vld [vmem:[%s2489_s5 + $0x28] sm:$0xff]  ;;  %v188_v22 = vld [vmem:[%s2489_s5 + $0x30] sm:$0xff]  ;;  %v189_v23 = vld [vmem:[%s2489_s5 + $0x38] sm:$0xff] }
  0x14   :  { %386 = vperm.xlu0 %2007, %v380_v16   ;;  %v1603_v24 = vld [vmem:[%s2489_s5 + $0x40] sm:$0xff]  ;;  %v1604_v25 = vld [vmem:[%s2489_s5 + $0x48] sm:$0xff]  ;;  %v1605_v26 = vld [vmem:[%s2489_s5 + $0x50] sm:$0xff] }
  0x15   :  { %391 = vperm.xlu1 %2008, %v381_v17   ;;  %v1606_v27 = vld [vmem:[%s2489_s5 + $0x58] sm:$0xff]  ;;  %v1623_v28 = vld [vmem:[%s2491_s7 + $0x20] sm:$0xff]  ;;  %v1624_v29 = vld [vmem:[%s2491_s7 + $0x28] sm:$0xff] }
  0x16   :  { %v1625_v30 = vld [vmem:[%s2491_s7 + $0x30] sm:$0xff]  ;;  %v1626_v31 = vld [vmem:[%s2491_s7 + $0x38] sm:$0xff]  ;;  %v1607_v32 = vld [vmem:[%s2489_s5 + $0x60] sm:$0xff] }
  0x17   :  { %v1608_v33 = vld [vmem:[%s2489_s5 + $0x68] sm:$0xff]  ;;  %v1609_v34 = vld [vmem:[%s2489_s5 + $0x70] sm:$0xff]  ;;  %v1610_v35 = vld [vmem:[%s2489_s5 + $0x78] sm:$0xff] }
  0x18   :  { %396 = vperm.xlu0 %2007, %v382_v18   ;;  %v1639_v36 = vld [vmem:[%s2489_s5 + $0x80] sm:$0xff]  ;;  %v1640_v37 = vld [vmem:[%s2489_s5 + $0x88] sm:$0xff]  ;;  %v1641_v38 = vld [vmem:[%s2489_s5 + $0x90] sm:$0xff] }
  0x19   :  { %401 = vperm.xlu1 %2008, %v383_v19   ;;  %v1642_v39 = vld [vmem:[%s2489_s5 + $0x98] sm:$0xff]  ;;  %v1659_v40 = vld [vmem:[%s2491_s7 + $0x40] sm:$0xff]  ;;  %v1660_v41 = vld [vmem:[%s2491_s7 + $0x48] sm:$0xff] }
  0x1a   :  { %v1643_v42 = vld [vmem:[%s2489_s5 + $0xa0] sm:$0xff]  ;;  %v1661_v43 = vld [vmem:[%s2491_s7 + $0x50] sm:$0xff]  ;;  %v1644_v44 = vld [vmem:[%s2489_s5 + $0xa8] sm:$0xff] }
  0x1b   :  { %v1662_v45 = vld [vmem:[%s2491_s7 + $0x58] sm:$0xff]  ;;  %v1645_v46 = vld [vmem:[%s2489_s5 + $0xb0] sm:$0xff]  ;;  %v174_v48 = vld [vmem:[%s2488_s4] sm:$0xff] }
  0x1c   :  { %212 = vperm.xlu0 %2007, %v186_v20   ;;  %v1646_v47 = vld [vmem:[%s2489_s5 + $0xb8] sm:$0xff]  ;;  %1823 = vmatprep.mubr.msk.f32.mxu1 %vm230_vm1, %v174_v48  ;;  %v175_v11 = vld [vmem:[%s2488_s4 + $0x8] sm:$0xff]  ;;  %v176_v12 = vld [vmem:[%s2488_s4 + $0x10] sm:$0xff] }
  0x1d   :  { %217 = vperm.xlu1 %2008, %v187_v21   ;;  %v177_v13 = vld [vmem:[%s2488_s4 + $0x18] sm:$0xff]  ;;  %v178_v14 = vld [vmem:[%s2488_s4 + $0x20] sm:$0xff]  ;;  %v179_v15 = vld [vmem:[%s2488_s4 + $0x28] sm:$0xff] }
  0x1e   :  { %v180_v16 = vld [vmem:[%s2488_s4 + $0x30] sm:$0xff]  ;;  %v181_v17 = vld [vmem:[%s2488_s4 + $0x38] sm:$0xff]  ;;  %v376_v18 = vld [vmem:[%s2490_s6] sm:$0xff] }
  0x1f   :  { %1843 = vmatprep.mubr.msk.f32.mxu0 %vm230_vm1, %v376_v18 }
  0x20   :  { %222 = vperm.xlu0 %2007, %v188_v22  }
  0x21   :  { %227 = vperm.xlu1 %2008, %v189_v23  }
  0x24   :  { %545 = vperm.xlu0 %2007, %v1603_v24  }
  0x25   :  { %550 = vperm.xlu1 %2008, %v1604_v25  }
  0x28   :  { %555 = vperm.xlu0 %2007, %v1605_v26  }
  0x29   :  { %560 = vperm.xlu1 %2008, %v1606_v27  }
  0x2c   :  { %740 = vperm.xlu0 %2007, %v1623_v28  }
  0x2d   :  { %745 = vperm.xlu1 %2008, %v1624_v29  }
  0x30   :  { %750 = vperm.xlu0 %2007, %v1625_v30  }
  0x31   :  { %755 = vperm.xlu1 %2008, %v1626_v31  }
  0x34   :  { %565 = vperm.xlu0 %2007, %v1607_v32  }
  0x35   :  { %570 = vperm.xlu1 %2008, %v1608_v33  }
  0x38   :  { %575 = vperm.xlu0 %2007, %v1609_v34  }
  0x39   :  { %580 = vperm.xlu1 %2008, %v1610_v35  }
  0x3c   :  { %899 = vperm.xlu0 %2007, %v1639_v36  }
  0x3d   :  { %904 = vperm.xlu1 %2008, %v1640_v37  }
  0x40   :  { %909 = vperm.xlu0 %2007, %v1641_v38  }
  0x41   :  { %914 = vperm.xlu1 %2008, %v1642_v39  }
  0x44   :  { %1094 = vperm.xlu0 %2007, %v1659_v40  }
  0x45   :  { %1099 = vperm.xlu1 %2008, %v1660_v41  }
  0x48   :  { %919 = vperm.xlu0 %2007, %v1643_v42  }
  0x49   :  { %1104 = vperm.xlu1 %2008, %v1661_v43  }
  0x4c   :  { %924 = vperm.xlu0 %2007, %v1644_v44  }
  0x4d   :  { %1109 = vperm.xlu1 %2008, %v1662_v45  }
  0x50   :  { %929 = vperm.xlu0 %2007, %v1645_v46  }
  0x51   :  { %934 = vperm.xlu1 %2008, %v1646_v47  }
  0x81   :  { %v53_v50 = vpop.permute.xlu1 %52 }
  0x83   :  { %v43_v49 = vpop.permute.xlu0 %42 }
  0x85   :  { %v58_v57 = vpop.permute.xlu1 %57 }
  0x87   :  { %v48_v51 = vpop.permute.xlu0 %47 }
  0x89   :  { %v198_v19 = vpop.permute.xlu1 %197 }
  0x8b   :  { %v193_v20 = vpop.permute.xlu0 %192 }
  0x8f   :  { %v203_v29 = vpop.permute.xlu0 %202 }
  0x90   :  { %v208_v26 = vpop.permute.xlu1 %207 }
  0xdb   :  { %v1811_v52 = vpop.f32.mrb[0].mxu0 }
  0xdc   :  { %v145_v53 = vadd.f32 %v1811_v52, %v48_v51  ;;  %v139_v54 = vpop.f32.mrb[1].mxu0  ;;  %v379_v51 = vld [vmem:[%s2490_s6 + $0x18] sm:$0xff]  ;;  %v1595_v52 = vld [vmem:[%s2488_s4 + $0x40] sm:$0xff] }
  0xdd   :  { %v140_v55 = vadd.f32 %v139_v54, %v43_v49  ;;  %v377_v49 = vld [vmem:[%s2490_s6 + $0x8] sm:$0xff]  ;;  %v387_v54 = vpop.permute.xlu0 %386 }
  0xde   :  { %vm159_vm2 = vcmp.ge.f32.partialorder %v145_v53, 0.0  ;;  %v163_v56 = vmul.f32 0.2, %v145_v53 }
  0xdf   :  { %vm158_vm3 = vcmp.ge.f32.partialorder %v140_v55, 0.0  ;;  %v162_v58 = vmul.f32 0.2, %v140_v55  ;;  %v1814_v59 = vpop.f32.mrb[2].mxu0 }
  0xe0   :  { %v155_v60 = vadd.f32 %v1814_v59, %v58_v57  ;;  %v149_v61 = vpop.f32.mrb[3].mxu0  ;;  %v167_v62 = vsel %vm159_vm2, %v145_v53, %v163_v56  ;;  %v392_v53 = vpop.permute.xlu1 %391 }
  0xe1   :  { %v150_v63 = vadd.f32 %v149_v61, %v53_v50  ;;  %v166_v0 = vsel %vm158_vm3, %v140_v55, %v162_v58  ;;  %v171_v1 = vmul.f32 1.4142135, %v167_v62  ;;  %v378_v50 = vld [vmem:[%s2490_s6 + $0x10] sm:$0xff]  ;;  %v397_v56 = vpop.permute.xlu0 %396 }
  0xe2   :  { %vm161_vm4 = vcmp.ge.f32.partialorder %v155_v60, 0.0  ;;  %v165_v2 = vmul.f32 0.2, %v155_v60  ;;  %v170_v3 = vmul.f32 1.4142135, %v166_v0 }
  0xe3   :  { %vm160_vm5 = vcmp.ge.f32.partialorder %v150_v63, 0.0  ;;  %v164_v4 = vmul.f32 0.2, %v150_v63 }
  0xe4   :  { %v169_v5 = vsel %vm161_vm4, %v155_v60, %v165_v2  ;;  %v1921_v6 = vpack.c.bf16 %v171_v1, %v170_v3  ;;  %v402_v55 = vpop.permute.xlu1 %401 }
  0xe5   :  { %v173_v7 = vmul.f32 1.4142135, %v169_v5  ;;  %v168_v8 = vsel %vm160_vm5, %v150_v63, %v164_v4  ;;  %v213_v63 = vpop.permute.xlu0 %212 }
  0xe6   :  { %v172_v9 = vmul.f32 1.4142135, %v168_v8  ;;  %1922 = vmatprep.subr.bf16.mxu1 %v1921_v6 }
  0xe7   :  { %1924 = vmatpush3.bf16.msra.mxu1 %v1921_v6 }
  0xe8   :  { %v1925_v10 = vpack.c.bf16 %v173_v7, %v172_v9  ;;  %v218_v61 = vpop.permute.xlu1 %217 }
  0xea   :  { %1926 = vmatprep.subr.bf16.mxu1 %v1925_v10 }
  0xeb   :  { %1928 = vmatpush3.bf16.msra.mxu1 %v1925_v10 }
  0xee   :  { %1824 = vmatmul.mubr.msk.f32.vlgmr.msra.gmra.mrb[0].mxu1 %vm230_vm1, %v175_v11 }
  0xef   :  { %1826 = vmatprep.mubr.msk.f32.mxu1 %vm230_vm1, %v176_v12 }
  0xf2   :  { %1827 = vmatmul.mubr.msk.f32.gmra.mrb[2].mxu1 %vm230_vm1, %v177_v13 }
  0xf3   :  { %1829 = vmatprep.mubr.msk.f32.mxu1 %vm230_vm1, %v178_v14  ;;  %v228_v14 = vpop.permute.xlu1 %227 }
  0xf6   :  { %1830 = vmatmul.mubr.msk.f32.gmra.mrb[4].mxu1 %vm230_vm1, %v179_v15 }
  0xf7   :  { %1832 = vmatprep.mubr.msk.f32.mxu1 %vm230_vm1, %v180_v16 }
  0xfa   :  { %1833 = vmatmul.mubr.msk.f32.gmra.mrb[6].mxu1 %vm230_vm1, %v181_v17  ;;  %v223_v17 = vpop.permute.xlu0 %222 }
 0x1c1   :  { %v1825_v21 = vpop.f32.mrb[0].mxu1 }
 0x1c2   :  { %v327_v22 = vadd.f32 %v1825_v21, %v198_v19  ;;  %v321_v23 = vpop.f32.mrb[1].mxu1 }
 0x1c3   :  { %v322_v24 = vadd.f32 %v321_v23, %v193_v20 }
 0x1c4   :  { %vm361_vm6 = vcmp.ge.f32.partialorder %v327_v22, 0.0  ;;  %v365_v25 = vmul.f32 0.2, %v327_v22 }
 0x1c5   :  { %vm360_vm7 = vcmp.ge.f32.partialorder %v322_v24, 0.0  ;;  %v364_v27 = vmul.f32 0.2, %v322_v24  ;;  %v1828_v28 = vpop.f32.mrb[2].mxu1 }
 0x1c6   :  { %v369_v30 = vsel %vm361_vm6, %v327_v22, %v365_v25  ;;  %v337_v31 = vadd.f32 %v1828_v28, %v208_v26  ;;  %v331_v32 = vpop.f32.mrb[3].mxu1 }
 0x1c7   :  { %v373_v33 = vmul.f32 1.4142135, %v369_v30  ;;  %v368_v34 = vsel %vm360_vm7, %v322_v24, %v364_v27  ;;  %v332_v35 = vadd.f32 %v331_v32, %v203_v29  ;;  %v1597_v32 = vld [vmem:[%s2488_s4 + $0x50] sm:$0xff] }
 0x1c8   :  { %v372_v36 = vmul.f32 1.4142135, %v368_v34  ;;  %vm363_vm8 = vcmp.ge.f32.partialorder %v337_v31, 0.0  ;;  %v367_v37 = vmul.f32 0.2, %v337_v31  ;;  %v1599_v34 = vld [vmem:[%s2488_s4 + $0x60] sm:$0xff] }
 0x1c9   :  { %vm362_vm9 = vcmp.ge.f32.partialorder %v332_v35, 0.0  ;;  %v366_v38 = vmul.f32 0.2, %v332_v35  ;;  %v1831_v39 = vpop.f32.mrb[4].mxu1 }
 0x1ca   :  { %v371_v40 = vsel %vm363_vm8, %v337_v31, %v367_v37  ;;  %v341_v41 = vpop.f32.mrb[5].mxu1  ;;  %v1929_v42 = vpack.c.bf16 %v373_v33, %v372_v36  ;;  %v347_v5 = vadd.f32 %v1831_v39, %v218_v61  ;;  %v1596_v31 = vld [vmem:[%s2488_s4 + $0x48] sm:$0xff]  ;;  %v1598_v33 = vld [vmem:[%s2488_s4 + $0x58] sm:$0xff]  ;;  %v1601_v36 = vld [vmem:[%s2488_s4 + $0x70] sm:$0xff]  ;;  %v551_v39 = vpop.permute.xlu1 %550 }
 0x1cb   :  { %v375_v43 = vmul.f32 1.4142135, %v371_v40  ;;  %v370_v44 = vsel %vm362_vm9, %v332_v35, %v366_v38  ;;  %v342_v9 = vadd.f32 %v341_v41, %v213_v63  ;;  %v1600_v35 = vld [vmem:[%s2488_s4 + $0x68] sm:$0xff]  ;;  %v1602_v37 = vld [vmem:[%s2488_s4 + $0x78] sm:$0xff]  ;;  %v1619_v38 = vld [vmem:[%s2490_s6 + $0x20] sm:$0xff]  ;;  %v546_v40 = vpop.permute.xlu0 %545 }
 0x1cc   :  { %v374_v45 = vmul.f32 1.4142135, %v370_v44  ;;  %1930 = vmatprep.subr.bf16.mxu0 %v1929_v42  ;;  %1877 = vmatprep.mubr.msk.f32.mxu1 %vm230_vm1, %v1619_v38 }
 0x1cd   :  { %v1834_v46 = vpop.f32.mrb[6].mxu1  ;;  %1932 = vmatpush3.bf16.msra.mxu0 %v1929_v42 }
 0x1ce   :  { %v351_v47 = vpop.f32.mrb[7].mxu1  ;;  %v1933_v48 = vpack.c.bf16 %v375_v43, %v374_v45  ;;  %v357_v18 = vadd.f32 %v1834_v46, %v228_v14  ;;  %v561_v46 = vpop.permute.xlu1 %560 }
 0x1cf   :  { %v352_v22 = vadd.f32 %v351_v47, %v223_v17 }
 0x1d0   :  { %1934 = vmatprep.subr.bf16.mxu0 %v1933_v48 }
 0x1d1   :  { %1936 = vmatpush3.bf16.msra.mxu0 %v1933_v48 }
 0x1d4   :  { %1844 = vmatmul.mubr.msk.f32.vlgmr.msra.gmra.mrb[4].mxu0 %vm230_vm1, %v377_v49  ;;  %v556_v49 = vpop.permute.xlu0 %555 }
 0x1d5   :  { %1846 = vmatprep.mubr.msk.f32.mxu0 %vm230_vm1, %v378_v50 }
 0x1d8   :  { %1847 = vmatmul.mubr.msk.f32.gmra.mrb[6].mxu0 %vm230_vm1, %v379_v51 }
 0x1d9   :  { %1857 = vmatprep.mubr.msk.f32.mxu0 %vm230_vm1, %v1595_v52 }
 0x2a7   :  { %v1845_v57 = vpop.f32.mrb[4].mxu0 }
 0x2a8   :  { %v488_v58 = vadd.f32 %v1845_v57, %v392_v53  ;;  %v482_v59 = vpop.f32.mrb[5].mxu0 }
 0x2a9   :  { %v483_v60 = vadd.f32 %v482_v59, %v387_v54 }
 0x2aa   :  { %vm502_vm10 = vcmp.ge.f32.partialorder %v488_v58, 0.0  ;;  %v506_v62 = vmul.f32 0.2, %v488_v58 }
 0x2ab   :  { %vm501_vm11 = vcmp.ge.f32.partialorder %v483_v60, 0.0  ;;  %v505_v0 = vmul.f32 0.2, %v483_v60  ;;  %v1848_v1 = vpop.f32.mrb[6].mxu0 }
 0x2ac   :  { %v510_v2 = vsel %vm502_vm10, %v488_v58, %v506_v62  ;;  %v498_v3 = vadd.f32 %v1848_v1, %v402_v55  ;;  %v492_v4 = vpop.f32.mrb[7].mxu0 }
 0x2ad   :  { %v514_v6 = vmul.f32 1.4142135, %v510_v2  ;;  %v509_v7 = vsel %vm501_vm11, %v483_v60, %v505_v0  ;;  %v493_v8 = vadd.f32 %v492_v4, %v397_v56 }
 0x2ae   :  { %v513_v10 = vmul.f32 1.4142135, %v509_v7  ;;  %vm504_vm12 = vcmp.ge.f32.partialorder %v498_v3, 0.0  ;;  %v508_v11 = vmul.f32 0.2, %v498_v3  ;;  %v1622_v7 = vld [vmem:[%s2490_s6 + $0x38] sm:$0xff] }
 0x2af   :  { %vm503_vm13 = vcmp.ge.f32.partialorder %v493_v8, 0.0  ;;  %v507_v12 = vmul.f32 0.2, %v493_v8  ;;  %v518_v13 = vadd.f32 %v514_v6, %v347_v5  ;;  %v1620_v5 = vld [vmem:[%s2490_s6 + $0x28] sm:$0xff]  ;;  %v1621_v6 = vld [vmem:[%s2490_s6 + $0x30] sm:$0xff] }
 0x2b0   :  { %v512_v15 = vsel %vm504_vm12, %v498_v3, %v508_v11  ;;  %v517_v16 = vadd.f32 %v513_v10, %v342_v9  ;;  %v746_v9 = vpop.permute.xlu1 %745  ;;  %v741_v10 = vpop.permute.xlu0 %740 }
 0x2b1   :  { %v516_v19 = vmul.f32 1.4142135, %v512_v15  ;;  %v511_v20 = vsel %vm503_vm13, %v493_v8, %v507_v12  ;;  %v522_v21 = vmul.f32 0.70710677, %v518_v13  ;;  %v1631_v8 = vld [vmem:[%s2488_s4 + $0x80] sm:$0xff] }
 0x2b2   :  { %v515_v23 = vmul.f32 1.4142135, %v511_v20  ;;  %v521_v24 = vmul.f32 0.70710677, %v517_v16 }
 0x2b3   :  { %v520_v25 = vadd.f32 %v516_v19, %v357_v18 }
 0x2b4   :  { %v1937_v26 = vpack.c.bf16 %v522_v21, %v521_v24  ;;  %v519_v27 = vadd.f32 %v515_v23, %v352_v22  ;;  %v756_v11 = vpop.permute.xlu1 %755  ;;  %v751_v12 = vpop.permute.xlu0 %750 }
 0x2b5   :  { %v524_v28 = vmul.f32 0.70710677, %v520_v25 }
 0x2b6   :  { %1938 = vmatprep.subr.bf16.mxu0 %v1937_v26  ;;  %v523_v29 = vmul.f32 0.70710677, %v519_v27 }
 0x2b7   :  { %1940 = vmatpush3.bf16.msra.mxu0 %v1937_v26 }
 0x2b8   :  { %v1941_v30 = vpack.c.bf16 %v524_v28, %v523_v29  ;;  %v571_v17 = vpop.permute.xlu1 %570  ;;  %v566_v19 = vpop.permute.xlu0 %565 }
 0x2ba   :  { %1942 = vmatprep.subr.bf16.mxu0 %v1941_v30 }
 0x2bb   :  { %1944 = vmatpush3.bf16.msra.mxu0 %v1941_v30 }
 0x2be   :  { %1858 = vmatmul.mubr.msk.f32.vlgmr.msra.gmra.mrb[8].mxu0 %vm230_vm1, %v1596_v31 }
 0x2bf   :  { %1860 = vmatprep.mubr.msk.f32.mxu0 %vm230_vm1, %v1597_v32 }
 0x2c2   :  { %1861 = vmatmul.mubr.msk.f32.gmra.mrb[10].mxu0 %vm230_vm1, %v1598_v33 }
 0x2c3   :  { %1863 = vmatprep.mubr.msk.f32.mxu0 %vm230_vm1, %v1599_v34  ;;  %v581_v34 = vpop.permute.xlu1 %580 }
 0x2c6   :  { %1864 = vmatmul.mubr.msk.f32.gmra.mrb[12].mxu0 %vm230_vm1, %v1600_v35 }
 0x2c7   :  { %1866 = vmatprep.mubr.msk.f32.mxu0 %vm230_vm1, %v1601_v36 }
 0x2ca   :  { %1867 = vmatmul.mubr.msk.f32.gmra.mrb[14].mxu0 %vm230_vm1, %v1602_v37  ;;  %v576_v37 = vpop.permute.xlu0 %575 }
 0x391   :  { %v1859_v41 = vpop.f32.mrb[8].mxu0 }
 0x392   :  { %v679_v42 = vadd.f32 %v1859_v41, %v551_v39  ;;  %v673_v43 = vpop.f32.mrb[9].mxu0 }
 0x393   :  { %v674_v44 = vadd.f32 %v673_v43, %v546_v40 }
 0x394   :  { %vm713_vm14 = vcmp.ge.f32.partialorder %v679_v42, 0.0  ;;  %v717_v45 = vmul.f32 0.2, %v679_v42 }
 0x395   :  { %vm712_vm15 = vcmp.ge.f32.partialorder %v674_v44, 0.0  ;;  %v716_v47 = vmul.f32 0.2, %v674_v44  ;;  %v1862_v48 = vpop.f32.mrb[10].mxu0 }
 0x396   :  { %v721_v50 = vsel %vm713_vm14, %v679_v42, %v717_v45  ;;  %v689_v51 = vadd.f32 %v1862_v48, %v561_v46  ;;  %v683_v52 = vpop.f32.mrb[11].mxu0 }
 0x397   :  { %v725_v53 = vmul.f32 1.4142135, %v721_v50  ;;  %v720_v54 = vsel %vm712_vm15, %v674_v44, %v716_v47  ;;  %v684_v55 = vadd.f32 %v683_v52, %v556_v49  ;;  %v1633_v52 = vld [vmem:[%s2488_s4 + $0x90] sm:$0xff] }
 0x398   :  { %v724_v56 = vmul.f32 1.4142135, %v720_v54  ;;  %vm715_vm0 = vcmp.ge.f32.partialorder %v689_v51, 0.0  ;;  %v719_v57 = vmul.f32 0.2, %v689_v51  ;;  %v1635_v54 = vld [vmem:[%s2488_s4 + $0xa0] sm:$0xff] }
 0x399   :  { %vm714_vm2 = vcmp.ge.f32.partialorder %v684_v55, 0.0  ;;  %v718_v58 = vmul.f32 0.2, %v684_v55  ;;  %v1865_v59 = vpop.f32.mrb[12].mxu0 }
 0x39a   :  { %v723_v60 = vsel %vm715_vm0, %v689_v51, %v719_v57  ;;  %v693_v61 = vpop.f32.mrb[13].mxu0  ;;  %v1945_v62 = vpack.c.bf16 %v725_v53, %v724_v56  ;;  %v699_v25 = vadd.f32 %v1865_v59, %v571_v17  ;;  %v1632_v51 = vld [vmem:[%s2488_s4 + $0x88] sm:$0xff]  ;;  %v1634_v53 = vld [vmem:[%s2488_s4 + $0x98] sm:$0xff]  ;;  %v1637_v56 = vld [vmem:[%s2488_s4 + $0xb0] sm:$0xff]  ;;  %v1233_v59 = vlaneseq }
 0x39b   :  { %v727_v63 = vmul.f32 1.4142135, %v723_v60  ;;  %v722_v0 = vsel %vm714_vm2, %v684_v55, %v718_v58  ;;  %v694_v29 = vadd.f32 %v693_v61, %v566_v19  ;;  %v1636_v55 = vld [vmem:[%s2488_s4 + $0xa8] sm:$0xff]  ;;  %v1638_v57 = vld [vmem:[%s2488_s4 + $0xb8] sm:$0xff]  ;;  %v1655_v58 = vld [vmem:[%s2490_s6 + $0x40] sm:$0xff] }
 0x39c   :  { %v726_v1 = vmul.f32 1.4142135, %v722_v0  ;;  %1946 = vmatprep.subr.bf16.mxu1 %v1945_v62  ;;  %1911 = vmatprep.mubr.msk.f32.mxu0 %vm230_vm1, %v1655_v58  ;;  %v2358_v60 = vshrl.u32 %v1233_v59, 7  ;;  %v1242_v61 = vld [vmem:[%s2484_s0] sm:$0xf] }
 0x39d   :  { %v1868_v2 = vpop.f32.mrb[14].mxu0  ;;  %1948 = vmatpush3.bf16.msra.mxu1 %v1945_v62 }
 0x39e   :  { %v703_v3 = vpop.f32.mrb[15].mxu0  ;;  %v1949_v4 = vpack.c.bf16 %v727_v63, %v726_v1  ;;  %v709_v38 = vadd.f32 %v1868_v2, %v581_v34  ;;  %v2364_v62 = vadd.s32 8, %v2358_v60  ;;  %v1249_v63 = vsub.s32 1, %v2358_v60 }
 0x39f   :  { %v704_v42 = vadd.f32 %v703_v3, %v576_v37  ;;  %v1245_v0 = vsub.s32 0, %v2358_v60  ;;  %v2034_v3 = vmov 1.0|1.0  }
 0x3a0   :  { %1950 = vmatprep.subr.bf16.mxu1 %v1949_v4  ;;  %v2368_v1 = vrot.slane %v1242_v61, %v1249_v63 }
 0x3a1   :  { %1952 = vmatpush3.bf16.msra.mxu1 %v1949_v4  ;;  %v2370_v2 = vrot.slane %v1242_v61, %v1245_v0  ;;  %v905_v4 = vpop.permute.xlu1 %904 }
 0x3a2   :  { %vm1260_vm7 = vcmp.eq.s32.totalorder %v2358_v60, %v2368_v1  ;;  %vm1264_vm8 = vcmp.eq.s32.totalorder %v2364_v62, %v2368_v1 }
 0x3a3   :  { %vm1969_vm9 = vmpackc.low %vm1264_vm8, %vm1260_vm7  ;;  %vm1259_vm10 = vcmp.eq.s32.totalorder %v2358_v60, %v2370_v2  ;;  %vm1263_vm11 = vcmp.eq.s32.totalorder %v2364_v62, %v2370_v2 }
 0x3a4   :  { %1878 = vmatmul.mubr.msk.f32.vlgmr.msra.gmra.mrb[8].mxu1 %vm230_vm1, %v1620_v5  ;;  %vm1971_vm12 = vmpackc.low %vm1263_vm11, %vm1259_vm10  ;;  %v900_v5 = vpop.permute.xlu0 %899 }
 0x3a5   :  { %1880 = vmatprep.mubr.msk.f32.mxu1 %vm230_vm1, %v1621_v6 }
 0x3a8   :  { %1881 = vmatmul.mubr.msk.f32.gmra.mrb[10].mxu1 %vm230_vm1, %v1622_v7 }
 0x3a9   :  { %1891 = vmatprep.mubr.msk.f32.mxu1 %vm230_vm1, %v1631_v8 }
 0x477   :  { %v1879_v13 = vpop.f32.mrb[8].mxu1 }
 0x478   :  { %v842_v14 = vadd.f32 %v1879_v13, %v746_v9  ;;  %v836_v15 = vpop.f32.mrb[9].mxu1 }
 0x479   :  { %v837_v16 = vadd.f32 %v836_v15, %v741_v10  ;;  %v910_v15 = vpop.permute.xlu0 %909 }
 0x47a   :  { %vm856_vm3 = vcmp.ge.f32.partialorder %v842_v14, 0.0  ;;  %v860_v18 = vmul.f32 0.2, %v842_v14 }
 0x47b   :  { %vm855_vm4 = vcmp.ge.f32.partialorder %v837_v16, 0.0  ;;  %v859_v20 = vmul.f32 0.2, %v837_v16  ;;  %v1882_v21 = vpop.f32.mrb[10].mxu1 }
 0x47c   :  { %v864_v22 = vsel %vm856_vm3, %v842_v14, %v860_v18  ;;  %v852_v23 = vadd.f32 %v1882_v21, %v756_v11  ;;  %v846_v24 = vpop.f32.mrb[11].mxu1  ;;  %v1257_v11 = vsub.s32 3, %v2358_v60 }
 0x47d   :  { %v868_v26 = vmul.f32 1.4142135, %v864_v22  ;;  %v863_v27 = vsel %vm855_vm4, %v837_v16, %v859_v20  ;;  %v847_v28 = vadd.f32 %v846_v24, %v751_v12  ;;  %v915_v12 = vpop.permute.xlu1 %914  ;;  %v1253_v22 = vsub.s32 2, %v2358_v60 }
 0x47e   :  { %v867_v30 = vmul.f32 1.4142135, %v863_v27  ;;  %vm858_vm5 = vcmp.ge.f32.partialorder %v852_v23, 0.0  ;;  %v862_v31 = vmul.f32 0.2, %v852_v23 }
 0x47f   :  { %vm857_vm6 = vcmp.ge.f32.partialorder %v847_v28, 0.0  ;;  %v861_v32 = vmul.f32 0.2, %v847_v28  ;;  %v872_v33 = vadd.f32 %v868_v26, %v699_v25  ;;  %v2384_v25 = vrot.slane %v1242_v61, %v1257_v11 }
 0x480   :  { %v866_v35 = vsel %vm858_vm5, %v852_v23, %v862_v31  ;;  %v871_v36 = vadd.f32 %v867_v30, %v694_v29 }
 0x481   :  { %v870_v39 = vmul.f32 1.4142135, %v866_v35  ;;  %v865_v40 = vsel %vm857_vm6, %v847_v28, %v861_v32  ;;  %v876_v41 = vmul.f32 0.70710677, %v872_v33  ;;  %v2390_v33 = vrot.slane %v1242_v61, %v1253_v22 }
 0x482   :  { %v869_v43 = vmul.f32 1.4142135, %v865_v40  ;;  %v875_v44 = vmul.f32 0.70710677, %v871_v36  ;;  %vm1262_vm2 = vcmp.eq.s32.totalorder %v2358_v60, %v2384_v25  ;;  %vm1266_vm3 = vcmp.eq.s32.totalorder %v2364_v62, %v2384_v25  ;;  %v1658_v40 = vld [vmem:[%s2490_s6 + $0x58] sm:$0xff] }
 0x483   :  { %v874_v45 = vadd.f32 %v870_v39, %v709_v38  ;;  %vm1985_vm4 = vmpackc.low %vm1266_vm3, %vm1262_vm2  ;;  %vm1261_vm5 = vcmp.eq.s32.totalorder %v2358_v60, %v2390_v33  ;;  %vm1265_vm6 = vcmp.eq.s32.totalorder %v2364_v62, %v2390_v33  ;;  %v1656_v38 = vld [vmem:[%s2490_s6 + $0x48] sm:$0xff]  ;;  %v1657_v39 = vld [vmem:[%s2490_s6 + $0x50] sm:$0xff]  ;;  %s2036_s6 = smov [#allocation2]  }
 0x484   :  { %v1953_v46 = vpack.c.bf16 %v876_v41, %v875_v44  ;;  %v873_v47 = vadd.f32 %v869_v43, %v704_v42  ;;  %vm1987_vm7 = vmpackc.low %vm1265_vm6, %vm1261_vm5  ;;  %v1236_v41 = vadd.s32 16, %v2358_v60  ;;  %v1237_v42 = vadd.s32 24, %v2358_v60  ;;  %s1568_s13 = sshll.u32 %s2036_s6, 4  ;;  %s1569_s13 = int_to_ptr.vmem [resolvable:$true] %s1568_s13 }
 0x485   :  { %v878_v48 = vmul.f32 0.70710677, %v874_v45  ;;  %v1238_v43 = vadd.s32 32, %v2358_v60  ;;  %v1239_v44 = vadd.s32 40, %v2358_v60  ;;  %v1240_v45 = vadd.s32 48, %v2358_v60  ;;  %s2009_s14 = scalar_lea.vmem %s1569_s13, 2048  ;;  %p2014_p1 = scmp.lt.s32.totalorder %s1569_s13, %s1569_s13 }
 0x486   :  { %1954 = vmatprep.subr.bf16.mxu1 %v1953_v46  ;;  %v877_v49 = vmul.f32 0.70710677, %v873_v47  ;;  %vm1268_vm8 = vcmp.eq.s32.totalorder %v1236_v41, %v2368_v1  ;;  %vm1270_vm10 = vcmp.eq.s32.totalorder %v1236_v41, %v2384_v25  ;;  %vm1274_vm11 = vcmp.eq.s32.totalorder %v1237_v42, %v2384_v25  ;;  %p2010_p0 = scmp.ne.s32.totalorder %s1569_s13, %s2009_s14  ;;  %p2015_p2 = scmp.lt.s32.totalorder %s2009_s14, %s2009_s14 }
 0x487   :  { %1956 = vmatpush3.bf16.msra.mxu1 %v1953_v46  ;;  %vm1280_vm5 = vcmp.eq.s32.totalorder %v1239_v44, %v2368_v1  ;;  %vm1278_vm6 = vcmp.eq.s32.totalorder %v1238_v43, %v2384_v25  ;;  %v1241_v46 = vadd.s32 56, %v2358_v60  ;;  %v2035_v47 = vmov 0.0  }
 0x488   :  { %v1957_v50 = vpack.c.bf16 %v878_v48, %v877_v49  ;;  %v1100_v48 = vpop.permute.xlu1 %1099  ;;  %v1095_v49 = vpop.permute.xlu0 %1094  ;;  %p2016_p3 = por %p2015_p2, %p2014_p1 }
 0x48a   :  { %1958 = vmatprep.subr.bf16.mxu1 %v1957_v50  ;;  %p2017_p4 = pnand %p2016_p3, %p2010_p0 }
 0x48b   :  { %1960 = vmatpush3.bf16.msra.mxu1 %v1957_v50 }
 0x48c   :  { %1970 = vmatprep.subr.msk.bf16.mxu1 %vm1969_vm9, %v2034_v3  ;;  %vm1272_vm9 = vcmp.eq.s32.totalorder %v1237_v42, %v2368_v1  ;;  %v1105_v50 = vpop.permute.xlu1 %1104 }
 0x48e   :  { %1892 = vmatmul.mubr.msk.f32.vlgmr.msra.gmra.mrb[12].mxu1 %vm230_vm1, %v1632_v51  ;;  %v920_v51 = vpop.permute.xlu0 %919 }
 0x48f   :  { %1894 = vmatprep.mubr.msk.f32.mxu1 %vm230_vm1, %v1633_v52  ;;  %1972 = vmatpush1.bf16.msk.msra.mxu1 %vm1971_vm12, %v2034_v3  ;;  %vm1973_vm12 = vmpackc.low %vm1272_vm9, %vm1268_vm8  ;;  %vm1275_vm9 = vcmp.eq.s32.totalorder %v1238_v43, %v2370_v2 }
 0x490   :  { %1974 = vmatprep.subr.msk.bf16.mxu1 %vm1973_vm12, %v2034_v3  ;;  %vm1281_vm12 = vcmp.eq.s32.totalorder %v1239_v44, %v2390_v33 }
 0x492   :  { %1895 = vmatmul.mubr.msk.f32.gmra.mrb[14].mxu1 %vm230_vm1, %v1634_v53  ;;  %v925_v58 = vpop.permute.xlu0 %924 }
 0x493   :  { %1897 = vmatprep.mubr.msk.f32.mxu1 %vm230_vm1, %v1635_v54 }
 0x496   :  { %1898 = vmatmul.mubr.msk.f32.gmra.mrb[16].mxu1 %vm230_vm1, %v1636_v55 }
 0x497   :  { %1900 = vmatprep.mubr.msk.f32.mxu1 %vm230_vm1, %v1637_v56  ;;  %v1110_v56 = vpop.permute.xlu1 %1109 }
 0x49a   :  { %1901 = vmatmul.mubr.msk.f32.gmra.mrb[18].mxu1 %vm230_vm1, %v1638_v57 }
 0x49b   :  { %1432 = vmatprep.mubr.f32.mxu1 %v2035_v47 }
 0x561   :  { %v1893_v6 = vpop.f32.mrb[12].mxu1 }
 0x562   :  { %v1033_v7 = vadd.f32 %v1893_v6, %v905_v4  ;;  %v1027_v8 = vpop.f32.mrb[13].mxu1 }
 0x563   :  { %v1028_v9 = vadd.f32 %v1027_v8, %v900_v5 }
 0x564   :  { %vm1067_vm13 = vcmp.ge.f32.partialorder %v1033_v7, 0.0  ;;  %v1071_v10 = vmul.f32 0.2, %v1033_v7 }
 0x565   :  { %vm1066_vm14 = vcmp.ge.f32.partialorder %v1028_v9, 0.0  ;;  %v1070_v13 = vmul.f32 0.2, %v1028_v9  ;;  %v1896_v14 = vpop.f32.mrb[14].mxu1 }
 0x566   :  { %v1075_v16 = vsel %vm1067_vm13, %v1033_v7, %v1071_v10  ;;  %v1043_v17 = vadd.f32 %v1896_v14, %v915_v12  ;;  %v1037_v18 = vpop.f32.mrb[15].mxu1  ;;  %vm1267_vm13 = vcmp.eq.s32.totalorder %v1236_v41, %v2370_v2  ;;  %v930_v12 = vpop.permute.xlu0 %929 }
 0x567   :  { %v1079_v19 = vmul.f32 1.4142135, %v1075_v16  ;;  %v1074_v20 = vsel %vm1066_vm14, %v1028_v9, %v1070_v13  ;;  %v1038_v21 = vadd.f32 %v1037_v18, %v910_v15  ;;  %vm1271_vm14 = vcmp.eq.s32.totalorder %v1237_v42, %v2370_v2  ;;  %v935_v9 = vpop.permute.xlu1 %934 }
 0x568   :  { %v1078_v23 = vmul.f32 1.4142135, %v1074_v20  ;;  %vm1069_vm15 = vcmp.ge.f32.partialorder %v1043_v17, 0.0  ;;  %v1073_v24 = vmul.f32 0.2, %v1043_v17  ;;  %vm1975_vm2 = vmpackc.low %vm1271_vm14, %vm1267_vm13 }
 0x569   :  { %vm1068_vm0 = vcmp.ge.f32.partialorder %v1038_v21, 0.0  ;;  %v1072_v26 = vmul.f32 0.2, %v1038_v21  ;;  %v2386_v27 = vpop.f32.mrb[16].mxu1  ;;  %1976 = vmatpush1.bf16.msk.msra.mxu1 %vm1975_vm2, %v2034_v3  ;;  %vm1286_vm2 = vcmp.eq.s32.totalorder %v1240_v45, %v2384_v25 }
 0x56a   :  { %v1077_v28 = vsel %vm1069_vm15, %v1043_v17, %v1073_v24  ;;  %v2388_v29 = vpop.f32.mrb[17].mxu1  ;;  %v1961_v30 = vpack.c.bf16 %v1079_v19, %v1078_v23  ;;  %vm1269_vm15 = vcmp.eq.s32.totalorder %v1236_v41, %v2390_v33  ;;  %v1053_v0 = vadd.f32 %v2386_v27, %v925_v58 }
 0x56b   :  { %v1081_v31 = vmul.f32 1.4142135, %v1077_v28  ;;  %v1076_v32 = vsel %vm1068_vm0, %v1038_v21, %v1072_v26  ;;  %vm1989_vm0 = vmpackc.low %vm1274_vm11, %vm1270_vm10  ;;  %vm1279_vm10 = vcmp.eq.s32.totalorder %v1239_v44, %v2370_v2  ;;  %vm1277_vm11 = vcmp.eq.s32.totalorder %v1238_v43, %v2390_v33 }
 0x56c   :  { %v1080_v34 = vmul.f32 1.4142135, %v1076_v32  ;;  %1962 = vmatprep.subr.bf16.mxu0 %v1961_v30  ;;  %vm1979_vm14 = vmpackc.low %vm1279_vm10, %vm1275_vm9  ;;  %v1048_v4 = vadd.f32 %v2388_v29, %v920_v51 }
 0x56d   :  { %v2396_v35 = vpop.f32.mrb[18].mxu1  ;;  %1964 = vmatpush3.bf16.msra.mxu0 %v1961_v30 }
 0x56e   :  { %v2398_v36 = vpop.f32.mrb[19].mxu1  ;;  %v1965_v37 = vpack.c.bf16 %v1081_v31, %v1080_v34  ;;  %v1063_v13 = vadd.f32 %v2396_v35, %v935_v9 }
 0x56f   :  { %v1058_v16 = vadd.f32 %v2398_v36, %v930_v12 }
 0x570   :  { %1966 = vmatprep.subr.bf16.mxu0 %v1965_v37 }
 0x571   :  { %1968 = vmatpush3.bf16.msra.mxu0 %v1965_v37 }
 0x572   :  { %1986 = vmatprep.subr.msk.bf16.mxu0 %vm1985_vm4, %v2034_v3  ;;  %vm1276_vm4 = vcmp.eq.s32.totalorder %v1238_v43, %v2368_v1 }
 0x573   :  { %vm1977_vm8 = vmpackc.low %vm1280_vm5, %vm1276_vm4  ;;  %vm1283_vm5 = vcmp.eq.s32.totalorder %v1240_v45, %v2370_v2 }
 0x574   :  { %1912 = vmatmul.mubr.msk.f32.vlgmr.msra.gmra.mrb[16].mxu0 %vm230_vm1, %v1656_v38  ;;  %1978 = vmatprep.subr.msk.bf16.mxu1 %vm1977_vm8, %v2034_v3  ;;  %vm1289_vm8 = vcmp.eq.s32.totalorder %v1241_v46, %v2390_v33 }
 0x575   :  { %1914 = vmatprep.mubr.msk.f32.mxu0 %vm230_vm1, %v1657_v39  ;;  %1988 = vmatpush1.bf16.msk.msra.mxu0 %vm1987_vm7, %v2034_v3  ;;  %vm1282_vm7 = vcmp.eq.s32.totalorder %v1239_v44, %v2384_v25 }
 0x576   :  { %1990 = vmatprep.subr.msk.bf16.mxu0 %vm1989_vm0, %v2034_v3  ;;  %vm1993_vm13 = vmpackc.low %vm1282_vm7, %vm1278_vm6  ;;  %1980 = vmatpush1.bf16.msk.msra.mxu1 %vm1979_vm14, %v2034_v3  ;;  %vm1288_vm0 = vcmp.eq.s32.totalorder %v1241_v46, %v2368_v1  ;;  %vm1287_vm6 = vcmp.eq.s32.totalorder %v1241_v46, %v2370_v2  ;;  %vm1285_vm7 = vcmp.eq.s32.totalorder %v1240_v45, %v2390_v33 }
 0x577   :  { %vm1983_vm10 = vmpackc.low %vm1287_vm6, %vm1283_vm5 }
 0x578   :  { %1915 = vmatmul.mubr.msk.f32.gmra.mrb[18].mxu0 %vm230_vm1, %v1658_v40  ;;  %vm1273_vm1 = vcmp.eq.s32.totalorder %v1237_v42, %v2390_v33 }
 0x579   :  { %vm1991_vm3 = vmpackc.low %vm1273_vm1, %vm1269_vm15  ;;  %vm1284_vm1 = vcmp.eq.s32.totalorder %v1240_v45, %v2368_v1  ;;  %1521 = vmatprep.mubr.f32.mxu0 %v2035_v47 }
 0x57a   :  { %1992 = vmatpush1.bf16.msk.msra.mxu0 %vm1991_vm3, %v2034_v3  ;;  %vm1995_vm15 = vmpackc.low %vm1281_vm12, %vm1277_vm11  ;;  %vm1290_vm3 = vcmp.eq.s32.totalorder %v1241_v46, %v2384_v25 }
 0x57b   :  { %1994 = vmatprep.subr.msk.bf16.mxu0 %vm1993_vm13, %v2034_v3  ;;  %vm1981_vm4 = vmpackc.low %vm1288_vm0, %vm1284_vm1  ;;  %vm1355_vm1 = vcmask 523264  }
 0x57c   :  { %1982 = vmatprep.subr.msk.bf16.mxu1 %vm1981_vm4, %v2034_v3  ;;  %vm1997_vm9 = vmpackc.low %vm1290_vm3, %vm1286_vm2 }
 0x57d   :  { %1984 = vmatpush1.bf16.msk.msra.mxu1 %vm1983_vm10, %v2034_v3  ;;  %vm1999_vm11 = vmpackc.low %vm1289_vm8, %vm1285_vm7 }
 0x57e   :  { %1996 = vmatpush1.bf16.msk.msra.mxu0 %vm1995_vm15, %v2034_v3 }
 0x57f   :  { %1998 = vmatprep.subr.msk.bf16.mxu0 %vm1997_vm9, %v2034_v3 }
 0x582   :  { %2000 = vmatpush1.bf16.msk.msra.mxu0 %vm1999_vm11, %v2034_v3 }
 0x647   :  { %v1913_v52 = vpop.f32.mrb[16].mxu0 }
 0x648   :  { %v1196_v53 = vadd.f32 %v1913_v52, %v1100_v48  ;;  %v1190_v54 = vpop.f32.mrb[17].mxu0 }
 0x649   :  { %v1191_v55 = vadd.f32 %v1190_v54, %v1095_v49 }
 0x64a   :  { %vm1210_vm12 = vcmp.ge.f32.partialorder %v1196_v53, 0.0  ;;  %v1214_v57 = vmul.f32 0.2, %v1196_v53 }
 0x64b   :  { %vm1209_vm13 = vcmp.ge.f32.partialorder %v1191_v55, 0.0  ;;  %v1213_v59 = vmul.f32 0.2, %v1191_v55  ;;  %v1916_v60 = vpop.f32.mrb[18].mxu0 }
 0x64c   :  { %v1218_v61 = vsel %vm1210_vm12, %v1196_v53, %v1214_v57  ;;  %v1206_v62 = vadd.f32 %v1916_v60, %v1110_v56  ;;  %v1200_v63 = vpop.f32.mrb[19].mxu0 }
 0x64d   :  { %v1222_v1 = vmul.f32 1.4142135, %v1218_v61  ;;  %v1217_v2 = vsel %vm1209_vm13, %v1191_v55, %v1213_v59  ;;  %v1201_v3 = vadd.f32 %v1200_v63, %v1105_v50 }
 0x64e   :  { %v1221_v5 = vmul.f32 1.4142135, %v1217_v2  ;;  %vm1212_vm14 = vcmp.ge.f32.partialorder %v1206_v62, 0.0  ;;  %v1216_v6 = vmul.f32 0.2, %v1206_v62 }
 0x64f   :  { %v1226_v7 = vadd.f32 %v1222_v1, %v1053_v0  ;;  %vm1211_vm15 = vcmp.ge.f32.partialorder %v1201_v3, 0.0  ;;  %v1215_v8 = vmul.f32 0.2, %v1201_v3 }
 0x650   :  { %v1225_v10 = vadd.f32 %v1221_v5, %v1048_v4  ;;  %v1220_v11 = vsel %vm1212_vm14, %v1206_v62, %v1216_v6 }
 0x651   :  { %v1224_v14 = vmul.f32 1.4142135, %v1220_v11  ;;  %v1219_v15 = vsel %vm1211_vm15, %v1201_v3, %v1215_v8  ;;  %v1230_v21 = vmul.f32 0.70710677, %v1226_v7 }
 0x652   :  { %v1229_v17 = vmul.f32 0.70710677, %v1225_v10  ;;  %v1223_v18 = vmul.f32 1.4142135, %v1219_v15 }
 0x653   :  { %v1228_v19 = vadd.f32 %v1224_v14, %v1063_v13 }
 0x654   :  { %v1227_v20 = vadd.f32 %v1223_v18, %v1058_v16  ;;  %1715 = vmatmul.mubr.msk.f32.vlgmr.msra.gmra.mrb[20].mxu1 %vm1355_vm1, %v1229_v17  ;;  %1735 = vmatmul.mubr.msk.f32.vlgmr.msra.gmra.mrb[20].mxu0 %vm1355_vm1, %v1229_v17 }
 0x655   :  { %1438 = vmatprep.mubr.f32.mxu1 %v2035_v47  ;;  %1527 = vmatprep.mubr.f32.mxu0 %v2035_v47  ;;  %v1232_v23 = vmul.f32 0.70710677, %v1228_v19 }
 0x656   :  { %v1231_v22 = vmul.f32 0.70710677, %v1227_v20 }
 0x658   :  { %1716 = vmatmul.mubr.msk.f32.gmra.mrb[22].mxu1 %vm1355_vm1, %v1230_v21  ;;  %1736 = vmatmul.mubr.msk.f32.gmra.mrb[22].mxu0 %vm1355_vm1, %v1230_v21 }
 0x659   :  { %1444 = vmatprep.mubr.f32.mxu1 %v2035_v47  ;;  %1533 = vmatprep.mubr.f32.mxu0 %v2035_v47 }
 0x65c   :  { %1717 = vmatmul.mubr.msk.f32.gmra.mrb[24].mxu1 %vm1355_vm1, %v1231_v22  ;;  %1737 = vmatmul.mubr.msk.f32.gmra.mrb[24].mxu0 %vm1355_vm1, %v1231_v22 }
 0x65d   :  { %1450 = vmatprep.mubr.f32.mxu1 %v2035_v47  ;;  %1539 = vmatprep.mubr.f32.mxu0 %v2035_v47 }
 0x660   :  { %1718 = vmatmul.mubr.msk.f32.gmra.mrb[26].mxu1 %vm1355_vm1, %v1232_v23  ;;  %1738 = vmatmul.mubr.msk.f32.gmra.mrb[26].mxu0 %vm1355_vm1, %v1232_v23 }
 0x727   :  { %v1434_v24 = vpop.f32.mrb[20].mxu1  ;;  %v1523_v25 = vpop.f32.mrb[20].mxu0 }
 0x728   :  { %1546 = vst [vmem:[#allocation2] sm:$0xff] %v1434_v24  ;;  %1555 = vst [vmem:[#allocation2 + $0x40] sm:$0xff] %v1523_v25  ;;  %v1436_v26 = vpop.f32.mrb[21].mxu1  ;;  %v1525_v27 = vpop.f32.mrb[21].mxu0 }
 0x729   :  { %1547 = vst [vmem:[#allocation2 + $0x8] sm:$0xff] %v1436_v26  ;;  %1556 = vst [vmem:[#allocation2 + $0x48] sm:$0xff] %v1525_v27 }
 0x72b   :  { %v1440_v28 = vpop.f32.mrb[22].mxu1  ;;  %v1529_v29 = vpop.f32.mrb[22].mxu0 }
 0x72c   :  { %1548 = vst [vmem:[#allocation2 + $0x10] sm:$0xff] %v1440_v28  ;;  %1557 = vst [vmem:[#allocation2 + $0x50] sm:$0xff] %v1529_v29  ;;  %v1442_v30 = vpop.f32.mrb[23].mxu1  ;;  %v1531_v31 = vpop.f32.mrb[23].mxu0 }
 0x72d   :  { %1549 = vst [vmem:[#allocation2 + $0x18] sm:$0xff] %v1442_v30  ;;  %1558 = vst [vmem:[#allocation2 + $0x58] sm:$0xff] %v1531_v31 }
 0x72f   :  { %v1446_v32 = vpop.f32.mrb[24].mxu1  ;;  %v1535_v33 = vpop.f32.mrb[24].mxu0 }
 0x730   :  { %1550 = vst [vmem:[#allocation2 + $0x20] sm:$0xff] %v1446_v32  ;;  %1559 = vst [vmem:[#allocation2 + $0x60] sm:$0xff] %v1535_v33  ;;  %v1448_v34 = vpop.f32.mrb[25].mxu1  ;;  %v1537_v35 = vpop.f32.mrb[25].mxu0 }
 0x731   :  { %1551 = vst [vmem:[#allocation2 + $0x28] sm:$0xff] %v1448_v34  ;;  %1560 = vst [vmem:[#allocation2 + $0x68] sm:$0xff] %v1537_v35 }
 0x733   :  { %v1452_v36 = vpop.f32.mrb[26].mxu1  ;;  %v1541_v37 = vpop.f32.mrb[26].mxu0 }
 0x734   :  { %1552 = vst [vmem:[#allocation2 + $0x30] sm:$0xff] %v1452_v36  ;;  %1561 = vst [vmem:[#allocation2 + $0x70] sm:$0xff] %v1541_v37  ;;  %v1454_v38 = vpop.f32.mrb[27].mxu1  ;;  %v1543_v39 = vpop.f32.mrb[27].mxu0 }
 0x735   :  { %1553 = vst [vmem:[#allocation2 + $0x38] sm:$0xff] %v1454_v38  ;;  %1562 = vst [vmem:[#allocation2 + $0x78] sm:$0xff] %v1543_v39 }
 0x736   :  { %2020 = shalt.err (!%p2017_p4)
}
 0x737   :  { %s2021_s16 = scalar_lea.hbm %s2492_s8, 2048 }
 0x738   :  { %p2022_p5 = scmp.ne.s32.totalorder %s2492_s8, %s2021_s16  ;;  %p2025_p6 = scmp.lt.u32.totalorder %s2021_s16, %s2492_s8 }
 0x73a   :  { %p2027_p7 = pnand %p2025_p6, %p2022_p5 }
 0x73c   :  { %2030 = shalt.err (!%p2027_p7)
}
 0x73d   :  { %s2037_s21 = smov 256   ;;  %s2038_s22 = smov 16  }
 0x73e   :  { %1574 = dma.vmem_to_hbm [thread:$0]  %s1569_s13, 2048, %s2492_s8, [#allocation3], %s2037_s21, %s2037_s21, %s2038_s22  }
 0x73f   :  { %2031 = dma.done.wait [#allocation3], 2048  }
 0x740   :  { %2032 = vsyncadd [#allocation3], 4294965248 }
 0x741   :  { %1578 = vsyncpa [#allocation3], 1 }

</bundles_post_ra>
